<compile_context>
chip_gen: v6e
topology: v6e:2x2x1
jax: 0.10.0
libtpu: 0.0.40
codegen_flags: <defaults>
</compile_context>

<pallas_src>
import functools
import math

import jax
import jax.numpy as jnp
from jax.experimental import pallas as pl
from jax.experimental.pallas import tpu as pltpu


_VMEM_LIMIT = 32 * 1024 * 1024  # explicit scoped-VMEM budget (safe on v5e/v6e/v7x)


def _cparams(*sem):
    return pltpu.CompilerParams(dimension_semantics=tuple(sem),
                                vmem_limit_bytes=_VMEM_LIMIT)


def _row_tile(m):
    """Row-tile for (B*L, D) kernels: big enough to pipeline, divides m."""
    if m <= 512:
        return m
    for t in (512, 256, 128, 64, 32, 16, 8):
        if m % t == 0:
            return t
    return m


def _time_chunk(L):
    """Time-chunk for the selective scan (T rows stored per grid step)."""
    if L % 8 == 0:
        return 8
    return L


def _silu(x):
    # exp on the EUP + approximate reciprocal (EUP vrcp) instead of a VALU divide.
    return x * pl.reciprocal(1.0 + jnp.exp(-x), approx=True)


# ----------------------------------------------------------------------------
# Pallas kernels
# ----------------------------------------------------------------------------
def _linear_kernel(x_ref, w_ref, b_ref, o_ref, *, act):
    y = jnp.dot(x_ref[...], w_ref[...], preferred_element_type=jnp.float32)
    y = y + b_ref[...]
    if act == "relu":
        y = jnp.maximum(y, 0.0)
    elif act == "softplus":  # numerically stable softplus
        y = jnp.maximum(y, 0.0) + jnp.log1p(jnp.exp(-jnp.abs(y)))
    o_ref[...] = y


def linear(x2d, w, b=None, act=None):
    m, kdim = x2d.shape
    n = w.shape[1]
    if b is None:
        b = jnp.zeros((n,), jnp.float32)
    tm = _row_tile(m)
    return pl.pallas_call(
        functools.partial(_linear_kernel, act=act),
        grid=(m // tm,),
        in_specs=[
            pl.BlockSpec((tm, kdim), lambda i: (i, 0)),
            pl.BlockSpec((kdim, n), lambda i: (0, 0)),
            pl.BlockSpec((1, n), lambda i: (0, 0)),
        ],
        out_specs=pl.BlockSpec((tm, n), lambda i: (i, 0)),
        out_shape=jax.ShapeDtypeStruct((m, n), jnp.float32),
        compiler_params=_cparams("parallel"),
    )(x2d.astype(jnp.bfloat16), w.astype(jnp.bfloat16),
      b.reshape(1, n).astype(jnp.float32))


def _ln_core(x, g_ref, b_ref):
    mu = jnp.mean(x, axis=-1, keepdims=True)
    xc = x - mu
    var = jnp.mean(xc * xc, axis=-1, keepdims=True)
    return xc * jax.lax.rsqrt(var + 1e-5) * g_ref[...] + b_ref[...]


def _layernorm_kernel(x_ref, g_ref, b_ref, o_ref):
    o_ref[...] = _ln_core(x_ref[...], g_ref, b_ref)


def _layernorm_res_kernel(x_ref, r_ref, g_ref, b_ref, o_ref):
    # residual add fused into the LayerNorm (saves one HBM round trip)
    o_ref[...] = _ln_core(x_ref[...] + r_ref[...], g_ref, b_ref)


def _layernorm_res_mask_kernel(x_ref, r_ref, km_ref, g_ref, b_ref, o_ref):
    # residual add + LayerNorm + padding-mask zeroing (masked_fill) fused
    o_ref[...] = _ln_core(x_ref[...] + r_ref[...], g_ref, b_ref) * km_ref[...]


def layernorm(x2d, g, b, residual=None, rowmask=None):
    m, d = x2d.shape
    tm = _row_tile(m)
    row_spec = pl.BlockSpec((tm, d), lambda i: (i, 0))
    par_spec = pl.BlockSpec((1, d), lambda i: (0, 0))
    msk_spec = pl.BlockSpec((tm, 1), lambda i: (i, 0))
    if residual is None:
        kernel = _layernorm_kernel
        in_specs = [row_spec, par_spec, par_spec]
        args = (x2d, g.reshape(1, d), b.reshape(1, d))
    elif rowmask is None:
        kernel = _layernorm_res_kernel
        in_specs = [row_spec, row_spec, par_spec, par_spec]
        args = (x2d, residual, g.reshape(1, d), b.reshape(1, d))
    else:
        kernel = _layernorm_res_mask_kernel
        in_specs = [row_spec, row_spec, msk_spec, par_spec, par_spec]
        args = (x2d, residual, rowmask, g.reshape(1, d), b.reshape(1, d))
    return pl.pallas_call(
        kernel,
        grid=(m // tm,),
        in_specs=in_specs,
        out_specs=row_spec,
        out_shape=jax.ShapeDtypeStruct((m, d), jnp.float32),
        compiler_params=_cparams("parallel"),
    )(*args)


def _ln_gate_silu_kernel(y_ref, z_ref, g_ref, b_ref, o_ref):
    # fused: LayerNorm(y) * SiLU(z)   (SS1D output norm + gate in one pass)
    yn = _ln_core(y_ref[...], g_ref, b_ref)
    o_ref[...] = yn * _silu(z_ref[...])


def ln_gate_silu(y2d, z2d, g, b):
    m, d = y2d.shape
    tm = _row_tile(m)
    row_spec = pl.BlockSpec((tm, d), lambda i: (i, 0))
    par_spec = pl.BlockSpec((1, d), lambda i: (0, 0))
    return pl.pallas_call(
        _ln_gate_silu_kernel,
        grid=(m // tm,),
        in_specs=[row_spec, row_spec, par_spec, par_spec],
        out_specs=row_spec,
        out_shape=jax.ShapeDtypeStruct((m, d), jnp.float32),
        compiler_params=_cparams("parallel"),
    )(y2d, z2d, g.reshape(1, d), b.reshape(1, d))


def _attention_kernel(q_ref, k_ref, v_ref, m_ref, o_ref, *, H, dk, dv, scale):
    qa = q_ref[...]                       # (L, H*dk)  bf16
    ka = k_ref[...]
    va = v_ref[...]
    addmask = m_ref[...]                  # (1, L) additive mask, broadcast over rows
    outs = []
    for h in range(H):                    # small static head loop, lane-dense I/O
        q = qa[:, h * dk:(h + 1) * dk]
        k = ka[:, h * dk:(h + 1) * dk]
        v = va[:, h * dv:(h + 1) * dv]
        s = jax.lax.dot_general(q, k, (((1,), (1,)), ((), ())),
                                preferred_element_type=jnp.float32)
        s = s * scale + addmask
        s = s - jnp.max(s, axis=-1, keepdims=True)
        p = jnp.exp(s)
        p = p * pl.reciprocal(jnp.sum(p, axis=-1, keepdims=True), approx=True)
        outs.append(jnp.dot(p.astype(va.dtype), v,
                            preferred_element_type=jnp.float32))
    o_ref[...] = jnp.concatenate(outs, axis=-1)      # one full-width store


def attention(q, k, v, addmask, scale, H, dk, dv):
    B, L, _ = q.shape
    qk_spec = pl.BlockSpec((None, L, H * dk), lambda b: (b, 0, 0))
    v_spec = pl.BlockSpec((None, L, H * dv), lambda b: (b, 0, 0))
    m_spec = pl.BlockSpec((None, 1, L), lambda b: (b, 0, 0))
    return pl.pallas_call(
        functools.partial(_attention_kernel, H=H, dk=dk, dv=dv, scale=scale),
        grid=(B,),
        in_specs=[qk_spec, qk_spec, v_spec, m_spec],
        out_specs=v_spec,
        out_shape=jax.ShapeDtypeStruct((B, L, H * dv), jnp.float32),
        compiler_params=_cparams("parallel"),
    )(q.astype(jnp.bfloat16), k.astype(jnp.bfloat16), v.astype(jnp.bfloat16),
      addmask)


def _conv1d_kernel(xpad_ref, w_ref, b_ref, o_ref, *, K, act):
    L, dout = o_ref.shape
    xpad = xpad_ref[...]                              # (L+K-1, Din)  bf16
    acc = jnp.zeros((L, dout), jnp.float32)
    for j in range(K):                                # static unroll over conv taps
        acc = acc + jnp.dot(xpad[j:j + L, :], w_ref[j],
                            preferred_element_type=jnp.float32)
    y = acc + b_ref[...]
    if act == "relu":
        y = jnp.maximum(y, 0.0)
    o_ref[...] = y


def conv1d_same(x, w, b, act=None):
    # torch Conv1d(padding=(K-1)//2) semantics; x (B,L,Din), w (K,Din,Dout)
    B, L, _ = x.shape
    K, din, dout = w.shape
    pad_l = (K - 1) // 2
    pad_r = K - 1 - pad_l
    xpad = jnp.pad(x, ((0, 0), (pad_l, pad_r), (0, 0))).astype(jnp.bfloat16)
    return pl.pallas_call(
        functools.partial(_conv1d_kernel, K=K, act=act),
        grid=(B,),
        in_specs=[
            pl.BlockSpec((None, L + K - 1, din), lambda bi: (bi, 0, 0)),
            pl.BlockSpec((K, din, dout), lambda bi: (0, 0, 0)),
            pl.BlockSpec((1, dout), lambda bi: (0, 0)),
        ],
        out_specs=pl.BlockSpec((None, L, dout), lambda bi: (bi, 0, 0)),
        out_shape=jax.ShapeDtypeStruct((B, L, dout), jnp.float32),
        compiler_params=_cparams("parallel"),
    )(xpad, w.astype(jnp.bfloat16), b.reshape(1, dout))


def _dwconv_silu_kernel(xpad_ref, w_ref, b_ref, o_ref, *, K):
    L, D = o_ref.shape
    xpad = xpad_ref[...]                              # (L+K-1, D)
    w = w_ref[...]                                    # (K, D)
    acc = jnp.zeros((L, D), jnp.float32)
    for j in range(K):
        acc = acc + xpad[j:j + L, :] * w[j:j + 1, :]
    y = acc + b_ref[...]
    o_ref[...] = _silu(y)


def dwconv_causal_silu(x, w, b):
    # depthwise causal conv (Mamba-style: left-pad K-1, keep first L) + SiLU
    B, L, D = x.shape
    K = w.shape[0]
    xpad = jnp.pad(x, ((0, 0), (K - 1, 0), (0, 0)))
    return pl.pallas_call(
        functools.partial(_dwconv_silu_kernel, K=K),
        grid=(B,),
        in_specs=[
            pl.BlockSpec((None, L + K - 1, D), lambda bi: (bi, 0, 0)),
            pl.BlockSpec((K, D), lambda bi: (0, 0)),
            pl.BlockSpec((1, D), lambda bi: (0, 0)),
        ],
        out_specs=pl.BlockSpec((None, L, D), lambda bi: (bi, 0, 0)),
        out_shape=jax.ShapeDtypeStruct((B, L, D), jnp.float32),
        compiler_params=_cparams("parallel"),
    )(xpad, w, b.reshape(1, D))


def _selective_scan_kernel(delta_ref, b_ref, c_ref, u_ref, a_ref, d_ref,
                           y_ref, h_ref, *, T):
    # delta_ref/u_ref: (T, Din); b_ref/c_ref: (T, N); a_ref: (N, Din); d_ref: (1, Din)
    # y_ref: (T, Din); h_ref: (N, Din) state carried across the time-chunk grid axis.
    @pl.when(pl.program_id(1) == 0)
    def _():
        h_ref[...] = jnp.zeros_like(h_ref)

    delta_c = delta_ref[...]
    u_c = u_ref[...]
    du_c = delta_c * u_c                              # (T, Din)
    bT = b_ref[...].T                                 # (N, T)  one small XLU transpose/chunk
    cT = c_ref[...].T                                 # (N, T)
    A_T = a_ref[...]                                  # (N, Din)
    Dv = d_ref[...]                                   # (1, Din)

    h = h_ref[...]
    ys = []
    for t in range(T):                                # static unroll inside the chunk
        # fused discretization (no HBM (B,L,N,Din) intermediates)
        dA_t = jnp.exp(delta_c[t:t + 1, :] * A_T)     # (N, Din)
        dBu_t = bT[:, t:t + 1] * du_c[t:t + 1, :]     # (N, Din) outer product via VPU
        h = dA_t * h + dBu_t
        # C·h as broadcast-multiply + sublane reduce (no M=1 MXU matmul)
        y_t = jnp.sum(cT[:, t:t + 1] * h, axis=0, keepdims=True) + Dv * u_c[t:t + 1, :]
        ys.append(y_t)
    h_ref[...] = h
    y_ref[...] = jnp.concatenate(ys, axis=0)          # store T rows at once


def selective_scan(delta, Bs, Cs, u, A_T, Dvec):
    # delta, u: (B, L, Din); Bs, Cs: (B, L, N); A_T: (N, Din); Dvec: (1, Din)
    B, L, Din = delta.shape
    N = Bs.shape[-1]
    T = _time_chunk(L)
    return pl.pallas_call(
        functools.partial(_selective_scan_kernel, T=T),
        grid=(B, L // T),
        in_specs=[
            pl.BlockSpec((None, T, Din), lambda b, c: (b, c, 0)),
            pl.BlockSpec((None, T, N), lambda b, c: (b, c, 0)),
            pl.BlockSpec((None, T, N), lambda b, c: (b, c, 0)),
            pl.BlockSpec((None, T, Din), lambda b, c: (b, c, 0)),
            pl.BlockSpec((N, Din), lambda b, c: (0, 0)),
            pl.BlockSpec((1, Din), lambda b, c: (0, 0)),
        ],
        out_specs=pl.BlockSpec((None, T, Din), lambda b, c: (b, c, 0)),
        out_shape=jax.ShapeDtypeStruct((B, L, Din), jnp.float32),
        scratch_shapes=[pltpu.VMEM((N, Din), jnp.float32)],
        compiler_params=_cparams("parallel", "arbitrary"),
    )(delta, Bs, Cs, u, A_T, Dvec)


# ----------------------------------------------------------------------------
# Module forward (glue in plain JAX; heavy compute in the kernels above)
# ----------------------------------------------------------------------------
def positional_encoding(L, d_model):
    pos = jnp.arange(L, dtype=jnp.float32)[:, None]
    i = jnp.arange(d_model)[None, :]
    angle = pos / jnp.power(10000.0, (2.0 * (i // 2).astype(jnp.float32)) / d_model)
    return jnp.where(i % 2 == 0, jnp.sin(angle), jnp.cos(angle))


def ss1d_forward(p, x):
    B, L, dm = x.shape
    din, N, R = p["d_inner"], p["d_state"], p["dt_rank"]
    x2 = x.reshape(B * L, dm)
    xz = linear(x2, p["in_proj_w"], p["in_proj_b"])                    # (B*L, 2*din)
    xs, z = xz[:, :din], xz[:, din:]
    xc = dwconv_causal_silu(xs.reshape(B, L, din), p["conv_w"], p["conv_b"])
    xc2 = xc.reshape(B * L, din)
    dbl = linear(xc2, p["x_proj_w"])                                   # (B*L, R + 2N)
    dts, Bs, Cs = dbl[:, :R], dbl[:, R:R + N], dbl[:, R + N:R + 2 * N]
    delta = linear(dts, p["dt_proj_w"], p["dt_proj_b"], act="softplus")
    y = selective_scan(delta.reshape(B, L, din),
                       Bs.reshape(B, L, N), Cs.reshape(B, L, N),
                       xc, p["A_T"], p["D"])                           # (B, L, din)
    y2 = ln_gate_silu(y.reshape(B * L, din), z, p["out_norm_g"], p["out_norm_b"])
    out = linear(y2, p["out_proj_w"], p["out_proj_b"])
    return out.reshape(B, L, dm)


def mha_forward(p, x, addmask, keep2d):
    B, L, dm = x.shape
    H, dk, dv = p["n_heads"], p["d_k"], p["d_v"]
    x2 = x.reshape(B * L, dm)
    q = linear(x2, p["wq"], p["bq"]).reshape(B, L, H * dk)
    k = linear(x2, p["wk"], p["bk"]).reshape(B, L, H * dk)
    v = linear(x2, p["wv"], p["bv"]).reshape(B, L, H * dv)
    o = attention(q, k, v, addmask, 1.0 / math.sqrt(dk), H, dk, dv)    # (B, L, H*dv)
    o2 = linear(o.reshape(B * L, H * dv), p["fc_w"], p["fc_b"])
    # fused residual + LayerNorm + masked_fill(pad, 0)
    o2 = layernorm(o2, p["ln_g"], p["ln_b"], residual=x2, rowmask=keep2d)
    return o2.reshape(B, L, dm)


def posffn_forward(p, x, keep2d):
    B, L, dm = x.shape
    y = conv1d_same(x, p["w1"], p["b1"], act="relu")
    y = conv1d_same(y, p["w2"], p["b2"])
    # fused residual + LayerNorm + masked_fill(pad, 0)
    y2 = layernorm(y.reshape(B * L, dm), p["ln_g"], p["ln_b"],
                   residual=x.reshape(B * L, dm), rowmask=keep2d)
    return y2.reshape(B, L, dm)


def fftblock_forward(p, x, addmask, keep2d):
    h = mha_forward(p["attn"], x, addmask, keep2d)
    h = posffn_forward(p["ffn"], h, keep2d)
    return h


def am_layer_forward(p, x, addmask, keep2d):
    h = fftblock_forward(p["fft"], x, addmask, keep2d)
    ss = ss1d_forward(p["ss1d"], h)
    B, L, dm = h.shape
    out = layernorm(ss.reshape(B * L, dm), p["ln_g"], p["ln_b"],
                    residual=h.reshape(B * L, dm))
    return out.reshape(B, L, dm)


def transmamba_de_forward(params, encoder_output, mask):
    B, L, dm = encoder_output.shape
    # DataEmbedding_pos: sinusoidal positional embedding (+ dropout == identity)
    x = encoder_output + positional_encoding(L, dm)[None]
    # Mamba_Layer preprocess: x = LN(x + SS1D(x))
    ss = ss1d_forward(params["pre_ss1d"], x)
    x = layernorm(ss.reshape(B * L, dm), params["pre_ln_g"], params["pre_ln_b"],
                  residual=x.reshape(B * L, dm)).reshape(B, L, dm)
    # single (B,1,L) additive mask broadcast over heads & query rows in-kernel;
    # per-row keep mask (B*L,1) fused into the sublayer LayerNorm kernels.
    addmask = jnp.where(mask, -1e9, 0.0).astype(jnp.float32).reshape(B, 1, L)
    keep2d = (~mask).astype(jnp.float32).reshape(B * L, 1)
    for lp in params["layers"]:
        x = am_layer_forward(lp, x, addmask, keep2d)
    out = linear(x.reshape(B * L, dm), params["out_proj_w"], params["out_proj_b"])
    return out.reshape(B, L, -1)


# ----------------------------------------------------------------------------
# Deterministic parameter initialization (synthetic weights)
# ----------------------------------------------------------------------------
def _dense(key, shape, scale=None):
    if scale is None:
        scale = 1.0 / math.sqrt(shape[0])
    return (scale * jax.random.normal(key, shape)).astype(jnp.float32)


def init_ss1d(key, d_model, d_state, d_conv, expand=2):
    d_inner = expand * d_model
    dt_rank = math.ceil(d_model / 16)
    ks = jax.random.split(key, 5)
    A_T = -jnp.tile(jnp.arange(1, d_state + 1, dtype=jnp.float32)[:, None], (1, d_inner))
    return dict(
        d_inner=d_inner, d_state=d_state, d_conv=d_conv, dt_rank=dt_rank,
        in_proj_w=_dense(ks[0], (d_model, 2 * d_inner)),
        in_proj_b=jnp.zeros((2 * d_inner,), jnp.float32),
        conv_w=_dense(ks[1], (d_conv, d_inner), scale=1.0 / math.sqrt(d_conv)),
        conv_b=jnp.zeros((d_inner,), jnp.float32),
        x_proj_w=_dense(ks[2], (d_inner, dt_rank + 2 * d_state)),
        dt_proj_w=_dense(ks[3], (dt_rank, d_inner)),
        dt_proj_b=0.05 * jnp.ones((d_inner,), jnp.float32),
        A_T=A_T,                                    # A^T with A[d, n] = -(n+1)
        D=jnp.ones((1, d_inner), jnp.float32),
        out_norm_g=jnp.ones((d_inner,), jnp.float32),
        out_norm_b=jnp.zeros((d_inner,), jnp.float32),
        out_proj_w=_dense(ks[4], (d_inner, d_model)),
        out_proj_b=jnp.zeros((d_model,), jnp.float32),
    )


def init_mha(key, d_model, n_heads, d_k, d_v):
    ks = jax.random.split(key, 4)
    return dict(
        n_heads=n_heads, d_k=d_k, d_v=d_v,
        wq=_dense(ks[0], (d_model, n_heads * d_k)), bq=jnp.zeros((n_heads * d_k,), jnp.float32),
        wk=_dense(ks[1], (d_model, n_heads * d_k)), bk=jnp.zeros((n_heads * d_k,), jnp.float32),
        wv=_dense(ks[2], (d_model, n_heads * d_v)), bv=jnp.zeros((n_heads * d_v,), jnp.float32),
        fc_w=_dense(ks[3], (n_heads * d_v, d_model)), fc_b=jnp.zeros((d_model,), jnp.float32),
        ln_g=jnp.ones((d_model,), jnp.float32), ln_b=jnp.zeros((d_model,), jnp.float32),
    )


def init_ffn(key, d_model, d_inner, kernel_size):
    k1, k2 = jax.random.split(key)
    return dict(
        w1=_dense(k1, (kernel_size, d_model, d_inner), scale=1.0 / math.sqrt(kernel_size * d_model)),
        b1=jnp.zeros((d_inner,), jnp.float32),
        w2=_dense(k2, (kernel_size, d_inner, d_model), scale=1.0 / math.sqrt(kernel_size * d_inner)),
        b2=jnp.zeros((d_model,), jnp.float32),
        ln_g=jnp.ones((d_model,), jnp.float32), ln_b=jnp.zeros((d_model,), jnp.float32),
    )


def init_transmamba_de(key, configs):
    cfg = configs["AM"]
    d_model, n_heads = cfg["d_model"], cfg["n_heads"]
    d_k = d_v = d_model // n_heads
    d_state, d_conv = cfg["d_state"], cfg["d_conv"]
    d_layers, c_out = cfg["d_layers"], cfg["c_out"]
    keys = jax.random.split(key, 2 + d_layers)
    layers = []
    for i in range(d_layers):
        k_attn, k_ffn, k_ss = jax.random.split(keys[2 + i], 3)
        layers.append(dict(
            fft=dict(attn=init_mha(k_attn, d_model, n_heads, d_k, d_v),
                     ffn=init_ffn(k_ffn, d_model, d_model, d_conv)),
            ss1d=init_ss1d(k_ss, d_model, d_state, 3),   # SS1D(..., d_conv=3) as in __init__
            ln_g=jnp.ones((d_model,), jnp.float32),
            ln_b=jnp.zeros((d_model,), jnp.float32),
        ))
    return dict(
        pre_ss1d=init_ss1d(keys[0], d_model, d_state, 3),
        pre_ln_g=jnp.ones((d_model,), jnp.float32),
        pre_ln_b=jnp.zeros((d_model,), jnp.float32),
        layers=layers,
        out_proj_w=_dense(keys[1], (d_model, c_out)),
        out_proj_b=jnp.zeros((c_out,), jnp.float32),
    )


if __name__ == "__main__":
    configs = {"AM": {"dec_in": 32, "d_model": 32, "dropout": 0.1, "factor": 1,
                      "n_heads": 4, "d_state": 16, "d_conv": 3, "d_layers": 2,
                      "c_out": 16, "output_attention": False}}
    key = jax.random.PRNGKey(0)
    kp, kx = jax.random.split(key)
    params = init_transmamba_de(kp, configs)

    B, L = 2, 8
    d_model = configs["AM"]["d_model"]
    encoder_output = jax.random.normal(kx, (B, L, d_model), dtype=jnp.float32)
    lengths = jnp.array([L, L - 2], dtype=jnp.int32)
    mask = jnp.arange(L)[None, :] >= lengths[:, None]   # True = padded position, shape (B, L)

    out = transmamba_de_forward(params, encoder_output, mask)
    out = jax.block_until_ready(out)
    assert out.shape == (B, L, configs["AM"]["c_out"])
    assert bool(jnp.all(jnp.isfinite(out)))
    print("KERNEL_OK")
</pallas_src>

<mosaic_0001>
module attributes {stable_mosaic.version = 11 : i64} {
  func.func @_linear_kernel(%arg0: i32, %arg1: memref<16x32xbf16, #tpu.memory_space<vmem>>, %arg2: memref<32x128xbf16, #tpu.memory_space<vmem>>, %arg3: memref<1x128xf32, #tpu.memory_space<vmem>>, %arg4: memref<16x128xf32, #tpu.memory_space<vmem>>) attributes {dimension_semantics = [#tpu.dimension_semantics<parallel>], iteration_bounds = array<i64: 1>, scalar_prefetch = 0 : i64, scratch_operands = 0 : i64, tpu.core_type = #tpu.core_type<tc>, window_params = [{transform_indices = @transform_0, window_bounds = array<i64: 16, 32>}, {pipeline_mode = #tpu.pipeline_mode<synchronous>, transform_indices = @transform_1, window_bounds = array<i64: 32, 128>}, {pipeline_mode = #tpu.pipeline_mode<synchronous>, transform_indices = @transform_2, window_bounds = array<i64: 1, 128>}, {transform_indices = @transform_3, window_bounds = array<i64: 16, 128>}]} {
    %c0 = arith.constant 0 : index
    %c0_0 = arith.constant 0 : index
    %0 = vector.load %arg1[%c0, %c0_0] : memref<16x32xbf16, #tpu.memory_space<vmem>>, vector<16x32xbf16>
    %c0_1 = arith.constant 0 : index
    %c0_2 = arith.constant 0 : index
    %1 = vector.load %arg2[%c0_1, %c0_2] : memref<32x128xbf16, #tpu.memory_space<vmem>>, vector<32x128xbf16>
    %cst = arith.constant dense<0.000000e+00> : vector<16x128xf32>
    %2 = tpu.matmul %0, %1, %cst {dimension_numbers = #tpu.dot_dimension_numbers<[1], [0], [0], [1], [0, 0, 1, 1], [], []>} : vector<16x32xbf16>, vector<32x128xbf16>, vector<16x128xf32> -> vector<16x128xf32>
    %c0_3 = arith.constant 0 : index
    %c0_4 = arith.constant 0 : index
    %3 = vector.load %arg3[%c0_3, %c0_4] : memref<1x128xf32, #tpu.memory_space<vmem>>, vector<1x128xf32>
    %4 = vector.broadcast %3 : vector<1x128xf32> to vector<16x128xf32>
    %5 = arith.addf %2, %4 : vector<16x128xf32>
    %c0_5 = arith.constant 0 : index
    %c0_6 = arith.constant 0 : index
    %6 = vector.load %arg4[%c0_5, %c0_6] : memref<16x128xf32, #tpu.memory_space<vmem>>, vector<16x128xf32>
    tpu.vector_store %arg4[%c0_5, %c0_6], %5 {strides = array<i32>} : memref<16x128xf32, #tpu.memory_space<vmem>>, vector<16x128xf32>,
    return
  }
  func.func @transform_0(%arg0: i32) -> (i32, i32) {
    %c0_i32 = arith.constant 0 : i32
    %c0_i32_0 = arith.constant 0 : i32
    return %arg0, %c0_i32 : i32, i32
  }
  func.func @transform_1(%arg0: i32) -> (i32, i32) {
    %c0_i32 = arith.constant 0 : i32
    %c0_i32_0 = arith.constant 0 : i32
    %c0_i32_1 = arith.constant 0 : i32
    return %c0_i32, %c0_i32_0 : i32, i32
  }
  func.func @transform_2(%arg0: i32) -> (i32, i32) {
    %c0_i32 = arith.constant 0 : i32
    %c0_i32_0 = arith.constant 0 : i32
    %c0_i32_1 = arith.constant 0 : i32
    return %c0_i32, %c0_i32_0 : i32, i32
  }
  func.func @transform_3(%arg0: i32) -> (i32, i32) {
    %c0_i32 = arith.constant 0 : i32
    %c0_i32_0 = arith.constant 0 : i32
    return %arg0, %c0_i32 : i32, i32
  }
}

</mosaic_0001>

<bundles_post_ra>
// kernel: tpu_custom_call.1
= control target key start
LH: loop header
LB: loop body
LE: loop exit
PB: predicated region body
PF: predicated region fallthrough
CT: control target
= control target key end

     0   :  { %8 = vsyncpa [#allocation3], 0  ;;  %s274_s0 = inlined_call_operand.hbm [shape: bf16[16,32], index: 0, kind: input, shape index: {}]   ;;  %s275_s1 = inlined_call_operand.hbm [shape: bf16[32,128], index: 1, kind: input, shape index: {}]   ;;  %s276_s2 = inlined_call_operand.vmem [shape: f32[1,128], index: 2, kind: input, shape index: {}]   ;;  %s277_s3 = inlined_call_operand.hbm [shape: f32[16,128], index: 3, kind: output, shape index: {}]  }
   0x1   :  { %9 = vsyncpa [#allocation6], 0 }
   0x2   :  { %10 = vsyncpa [#allocation4], 0  ;;  %s233_s12 = smov [#allocation2]  }
   0x3   :  { %s16_s13 = sshll.u32 %s233_s12, 4  ;;  %s17_s13 = int_to_ptr.vmem [resolvable:$true] %s16_s13 }
   0x4   :  { %s175_s14 = scalar_lea.vmem %s17_s13, 128  ;;  %p180_p1 = scmp.lt.s32.totalorder %s17_s13, %s17_s13 }
   0x5   :  { %p176_p0 = scmp.ne.s32.totalorder %s17_s13, %s175_s14  ;;  %p181_p2 = scmp.lt.s32.totalorder %s175_s14, %s175_s14 }
   0x7   :  { %p182_p3 = por %p181_p2, %p180_p1 }
   0x9   :  { %p183_p4 = pnand %p182_p3, %p176_p0 }
   0xb   :  { %186 = shalt.err (!%p183_p4)
}
   0xc   :  { %s234_s15 = smov 64   ;;  %s235_s16 = smov 4  }
   0xd   :  { %22 = dma.hbm_to_vmem [thread:$0]  %s274_s0, 128, %s17_s13, [#allocation3], %s234_s15, %s234_s15, %s235_s16  }
   0xe   :  { %s236_s19 = smov [#allocation5]  }
   0xf   :  { %s28_s20 = sshll.u32 %s236_s19, 4  ;;  %s29_s20 = int_to_ptr.vmem [resolvable:$true] %s28_s20 }
  0x10   :  { %s195_s21 = scalar_lea.vmem %s29_s20, 256  ;;  %p200_p6 = scmp.lt.s32.totalorder %s29_s20, %s29_s20 }
  0x11   :  { %p196_p5 = scmp.ne.s32.totalorder %s29_s20, %s195_s21  ;;  %p201_p7 = scmp.lt.s32.totalorder %s195_s21, %s195_s21 }
  0x13   :  { %p202_p8 = por %p201_p7, %p200_p6 }
  0x15   :  { %p203_p9 = pnand %p202_p8, %p196_p5 }
  0x17   :  { %206 = shalt.err (!%p203_p9)
}
  0x18   :  { %34 = dma.hbm_to_vmem [thread:$0]  %s275_s1, 256, %s29_s20, [#allocation6], %s234_s15, %s234_s15, %s235_s16  }
  0x19   :  { %227 = dma.done.wait [#allocation3], 128  }
  0x1a   :  { %228 = vsyncadd [#allocation3], 4294967168 }
  0x1b   :  { %229 = dma.done.wait [#allocation6], 256  }
  0x1c   :  { %230 = vsyncadd [#allocation6], 4294967040  ;;  %v237_v0 = vmov 0.0   ;;  %vm238_vm0 = vmmov 0   ;;  %v164_v1 = vld [vmem:[#allocation5 + $0x8] sm:$0xff]   ;;  %v165_v2 = vld [vmem:[#allocation5] sm:$0xff]  }
  0x1d   :  { %147 = vmatprep.subr.bf16.mxu0 %v237_v0  ;;  %151 = vmatprep.mubr.msk.bf16.mxu0 %vm238_vm0, %v237_v0  ;;  %v166_v3 = vld [vmem:[#allocation2] sm:$0xff]   ;;  %vm74_vm1 = vcmask 261120   ;;  %s239_s1 = smov [#allocation7]  }
  0x1e   :  { %148 = vmatpush3.bf16.msra.mxu0 %v164_v1  ;;  %v139_v4 = vld [vmem:[%s276_s2] ss:$0 sm:$0xff]  ;;  %s126_s25 = sshll.u32 %s239_s1, 4  ;;  %s127_s25 = int_to_ptr.vmem [resolvable:$true] %s126_s25 }
  0x1f   :  { %149 = vmatprep.subr.bf16.mxu0 %v237_v0  ;;  %s207_s26 = scalar_lea.vmem %s127_s25, 256  ;;  %p212_p11 = scmp.lt.s32.totalorder %s127_s25, %s127_s25 }
  0x20   :  { %p208_p10 = scmp.ne.s32.totalorder %s127_s25, %s207_s26  ;;  %p213_p12 = scmp.lt.s32.totalorder %s207_s26, %s207_s26 }
  0x22   :  { %150 = vmatpush3.bf16.msra.mxu0 %v165_v2  ;;  %p214_p13 = por %p213_p12, %p212_p11 }
  0x24   :  { %p215_p0 = pnand %p214_p13, %p208_p10 }
  0x25   :  { %152 = vmatmul.mubr.msk.bf16.vlgmr.msra.gmra.mxu0 %vm74_vm1, %v166_v3 }
  0xe5   :  { %v112_v5 = vpop.f32.mrf.mxu0 }
  0xe6   :  { %v113_v6 = vadd.f32 %v139_v4, %v112_v5 }
  0xe7   :  { %v153_v7 = vpop.f32.mrf.mxu0 }
  0xe8   :  { %119 = vst [vmem:[#allocation7] sm:$0xff] %v113_v6 }
  0xe9   :  { %v115_v8 = vpop.f32.mrf.mxu0 }
  0xea   :  { %v116_v9 = vadd.f32 %v139_v4, %v115_v8 }
  0xeb   :  { %v154_v10 = vpop.f32.mrf.mxu0 }
  0xec   :  { %120 = vst [vmem:[#allocation7 + $0x8] sm:$0xff] %v116_v9 }
  0xed   :  { %218 = shalt.err (!%p215_p0)
}
  0xee   :  { %s240_s27 = smov 128   ;;  %s241_s2 = smov 8  }
  0xef   :  { %132 = dma.vmem_to_hbm [thread:$0]  %s127_s25, 256, %s277_s3, [#allocation4], %s240_s27, %s240_s27, %s241_s2  }
  0xf0   :  { %231 = dma.done.wait [#allocation4], 256  }
  0xf1   :  { %232 = vsyncadd [#allocation4], 4294967040 }
  0xf2   :  { %136 = vsyncpa [#allocation3], 1 }
  0xf3   :  { %137 = vsyncpa [#allocation6], 1 }
  0xf4   :  { %138 = vsyncpa [#allocation4], 1 }

</bundles_post_ra>
